<compile_context>
chip_gen: v6e
topology: v6e:2x2x1
jax: 0.10.0
libtpu: 0.0.40
codegen_flags: <defaults>
</compile_context>

<pallas_src>
import numpy as np

import jax
import jax.numpy as jnp
from jax import lax
from jax.experimental import pallas as pl
from jax.experimental.pallas import tpu as pltpu

DP = 128          # feature dims padded to a full 128-lane vreg
NEG_SLOPE = 0.01  # torch F.leaky_relu default
L2_EPS = 1e-12    # torch F.normalize default


def _round_up(x, m):
    return (x + m - 1) // m * m


def _choose_tiles(n):
    """Row / contraction tile sizes.

    Power-of-two multiples of 128, tm <= tk (so tm | tk and the padded size is
    divisible by both).  tm is capped so the row grid keeps >= ~4 tiles when the
    graph is big enough (v7x 2-TC sharding); tk is kept long (>= 512 where
    possible) so the 128-wide-output matmul keeps an efficient MXU cadence.
    """
    n128 = _round_up(n, 128)
    tk = 128
    while tk < 2048 and tk * 2 <= n128:
        tk *= 2
    tm = 128
    while tm < 1024 and tm * 4 <= n128:
        tm *= 2
    n_pad = _round_up(n, max(tm, tk))
    return tm, tk, n_pad


def ngcf_layer_kernel(cols_ref, nnz_ref,                 # SMEM 1-D int32 (prefetch)
                      adj_ref, ego_k_ref, ego_m_ref,     # VMEM tiles (bf16)
                      wg_ref, bg_ref, wb_ref, bb_ref,
                      ego_out_ref, norm_out_ref,
                      acc_ref):                          # VMEM (TM, DP) f32
    i = pl.program_id(0)   # row tile
    j = pl.program_id(1)   # position in this row tile's nonzero-column-block list

    @pl.when(j == 0)
    def _init():
        acc_ref[...] = jnp.zeros_like(acc_ref)

    # side_embeddings accumulation: adj @ ego over this row tile's nonzero column
    # blocks only.  Padding steps (j >= nnz[i]) repeat the previous block index,
    # so no new DMA was issued for them and the MXU work is skipped here.
    @pl.when(j < nnz_ref[i])
    def _accumulate():
        acc_ref[...] += jnp.dot(adj_ref[...], ego_k_ref[...],
                                preferred_element_type=jnp.float32)

    # Epilogue once per row tile: the two Linears, leaky_relu, bi term, L2 norm.
    @pl.when(j == pl.num_programs(1) - 1)
    def _epilogue():
        side = acc_ref[...]                             # (TM, DP) f32
        side_bf = side.astype(jnp.bfloat16)

        # sum_embeddings = leaky_relu(GC_Linear(side))
        s = jnp.dot(side_bf, wg_ref[...],
                    preferred_element_type=jnp.float32) + bg_ref[...]
        sum_emb = jnp.where(s >= 0, s, NEG_SLOPE * s)

        # bi_embeddings = leaky_relu(Bi_Linear(ego * side))
        bi_in = (ego_m_ref[...].astype(jnp.float32) * side).astype(jnp.bfloat16)
        b = jnp.dot(bi_in, wb_ref[...],
                    preferred_element_type=jnp.float32) + bb_ref[...]
        bi_emb = jnp.where(b >= 0, b, NEG_SLOPE * b)

        new_ego = sum_emb + bi_emb
        # TODO(synk): nn.Dropout applied as identity (inference / eval mode).
        ego_out_ref[...] = new_ego.astype(ego_out_ref.dtype)

        # F.normalize(x, p=2, dim=1) = x / max(||x||, eps)
        #                            = x * rsqrt(max(||x||^2, eps^2))
        # Padded lanes of new_ego are exactly zero (weights/biases zero-padded),
        # so the 128-lane reduction equals the norm over the real dout lanes.
        nrm2 = jnp.sum(new_ego * new_ego, axis=1, keepdims=True)
        nrmd = new_ego * lax.rsqrt(jnp.maximum(nrm2, L2_EPS * L2_EPS))
        norm_out_ref[...] = nrmd.astype(norm_out_ref.dtype)


def ngcf_layer(adj_p, cols, nnz, max_nnz, ego_p, Wg_p, bg_p, Wb_p, bb_p, *, tm, tk):
    """One NGCF propagation layer on padded operands.

    adj_p : (NP, NP) bf16        cols : (NP//tm * max_nnz,) int32 (flat, SMEM)
    nnz   : (NP//tm,) int32      ego_p : (NP, DP) bf16
    Wg_p/Wb_p : (DP, DP) bf16 (y = x @ W + b layout)   bg_p/bb_p : (1, DP) f32
    Returns (new_ego (NP, DP) bf16, norm (NP, DP) bf16).
    """
    NP = adj_p.shape[0]
    grid = (NP // tm, max_nnz)

    def adj_map(i, j, cols_ref, nnz_ref):
        return (i, cols_ref[i * max_nnz + j])

    def egok_map(i, j, cols_ref, nnz_ref):
        return (cols_ref[i * max_nnz + j], 0)

    def row_map(i, j, cols_ref, nnz_ref):
        return (i, 0)

    def const_map(i, j, cols_ref, nnz_ref):
        return (0, 0)

    grid_spec = pltpu.PrefetchScalarGridSpec(
        num_scalar_prefetch=2,
        grid=grid,
        in_specs=[
            pl.BlockSpec((tm, tk), adj_map),    # adj tile (only nonzero blocks DMA'd)
            pl.BlockSpec((tk, DP), egok_map),   # ego (contraction tiles, gathered)
            pl.BlockSpec((tm, DP), row_map),    # ego (row tile, for bi term)
            pl.BlockSpec((DP, DP), const_map),  # Wg (resident)
            pl.BlockSpec((1, DP),  const_map),  # bg
            pl.BlockSpec((DP, DP), const_map),  # Wb (resident)
            pl.BlockSpec((1, DP),  const_map),  # bb
        ],
        out_specs=(
            pl.BlockSpec((tm, DP), row_map),    # new ego (bf16)
            pl.BlockSpec((tm, DP), row_map),    # L2-normalized ego (bf16)
        ),
        scratch_shapes=[pltpu.VMEM((tm, DP), jnp.float32)],
    )

    return pl.pallas_call(
        ngcf_layer_kernel,
        grid_spec=grid_spec,
        out_shape=(jax.ShapeDtypeStruct((NP, DP), jnp.bfloat16),
                   jax.ShapeDtypeStruct((NP, DP), jnp.bfloat16)),
        compiler_params=pltpu.CompilerParams(
            dimension_semantics=("parallel", "arbitrary"),
            vmem_limit_bytes=48 * 1024 * 1024,
        ),
    )(cols, nnz, adj_p, ego_p, ego_p, Wg_p, bg_p, Wb_p, bb_p)


def _block_sparse_tables(adj_np, N, NP, tm, tk):
    """Per-row-tile compact lists of nonzero column-block indices.

    Built from the nonzero structure of the original (un-padded) adjacency, so no
    padded f32 copy is materialized.  Lists are padded by repeating the last
    block index (Pallas skips the re-DMA of an unchanged block index) and
    flattened to 1-D int32 for tight SMEM padding.
    """
    nbi, nbk = NP // tm, NP // tk
    mask = np.zeros((nbi, nbk), dtype=bool)
    nz_r, nz_c = np.nonzero(adj_np)
    if nz_r.size:
        mask[nz_r // tm, nz_c // tk] = True
    counts = mask.sum(axis=1).astype(np.int32)
    max_nnz = max(int(counts.max()) if counts.size else 0, 1)
    cols = np.zeros((nbi, max_nnz), dtype=np.int32)
    for i in range(nbi):
        idx = np.nonzero(mask[i])[0]
        if idx.size:
            cols[i, :idx.size] = idx
            cols[i, idx.size:] = idx[-1]          # repeat last -> no extra DMA
    return (jnp.asarray(cols.reshape(-1), jnp.int32),
            jnp.asarray(counts, jnp.int32),
            max_nnz)


def ngcf_forward(adj, user_emb, item_emb, gc_params, bi_params, n_users):
    """NGCF.forward. gc_params/bi_params: lists of (W (out,in) f32, b (out,) f32)."""
    ego = jnp.concatenate([user_emb, item_emb], axis=0).astype(jnp.float32)
    N, d0 = ego.shape
    assert d0 <= DP and all(W.shape[0] <= DP for W, _ in gc_params)

    tm, tk, NP = _choose_tiles(N)

    # Block-sparsity tables from the original adjacency's nonzero structure.
    # TODO(synk): for production graphs, derive these (and the padded bf16
    # adjacency tiles) directly from the sparse COO/CSR structure instead of a
    # dense N x N array.
    adj_np = np.asarray(jax.device_get(adj), dtype=np.float32)
    cols, nnz, max_nnz = _block_sparse_tables(adj_np, N, NP, tm, tk)

    # Padded bf16 adjacency (halves the dominant HBM stream vs f32).
    adj_p = jnp.zeros((NP, NP), jnp.bfloat16).at[:N, :N].set(adj.astype(jnp.bfloat16))
    ego_p = jnp.zeros((NP, DP), jnp.bfloat16).at[:N, :d0].set(ego.astype(jnp.bfloat16))

    all_emb = [ego]
    for (Wg, bg), (Wb, bb) in zip(gc_params, bi_params):
        dout, din = Wg.shape
        # Zero-pad weights/biases to 128x128 / 1x128 (lane-dense; padded cols stay 0
        # so padded lanes of the layer output are exactly zero).
        Wg_p = jnp.zeros((DP, DP), jnp.bfloat16).at[:din, :dout].set(Wg.T.astype(jnp.bfloat16))
        Wb_p = jnp.zeros((DP, DP), jnp.bfloat16).at[:din, :dout].set(Wb.T.astype(jnp.bfloat16))
        bg_p = jnp.zeros((1, DP), jnp.float32).at[0, :dout].set(bg.astype(jnp.float32))
        bb_p = jnp.zeros((1, DP), jnp.float32).at[0, :dout].set(bb.astype(jnp.float32))

        ego_p, norm_p = ngcf_layer(adj_p, cols, nnz, max_nnz, ego_p,
                                   Wg_p, bg_p, Wb_p, bb_p, tm=tm, tk=tk)
        all_emb.append(norm_p[:N, :dout].astype(jnp.float32))

    all_emb = jnp.concatenate(all_emb, axis=1)
    return all_emb[:n_users], all_emb[n_users:]


# --- deterministic parameter init (mirrors the module's __init__ shapes) -----
def xavier_uniform(key, shape):
    fan_in, fan_out = shape
    bound = (6.0 / (fan_in + fan_out)) ** 0.5
    return jax.random.uniform(key, shape, jnp.float32, -bound, bound)


def linear_init(key, din, dout):
    # nn.Linear default init, torch layout (out, in)
    kw, kb = jax.random.split(key)
    bound = 1.0 / (din ** 0.5)
    W = jax.random.uniform(kw, (dout, din), jnp.float32, -bound, bound)
    b = jax.random.uniform(kb, (dout,), jnp.float32, -bound, bound)
    return W, b


if __name__ == "__main__":
    n_users, n_items = 8, 8
    embedding_dim = 32
    weight_size = [32, 16]
    dropout_list = [0.1, 0.1]  # identity at inference
    N = n_users + n_items

    key = jax.random.PRNGKey(0)
    k_u, k_i, k_adj, k_l = jax.random.split(key, 4)

    user_emb = xavier_uniform(k_u, (n_users, embedding_dim))
    item_emb = xavier_uniform(k_i, (n_items, embedding_dim))

    # deterministic symmetric-normalized bipartite adjacency
    # (dense stand-in for the sparse `adj` argument of forward())
    R = (jax.random.uniform(k_adj, (n_users, n_items)) < 0.3).astype(jnp.float32)
    A = jnp.zeros((N, N), jnp.float32)
    A = A.at[:n_users, n_users:].set(R)
    A = A.at[n_users:, :n_users].set(R.T)
    deg = jnp.sum(A, axis=1)
    d_inv_sqrt = jnp.where(deg > 0, deg ** -0.5, 0.0)
    adj = A * d_inv_sqrt[:, None] * d_inv_sqrt[None, :]

    dims = [embedding_dim] + weight_size
    keys = jax.random.split(k_l, 2 * len(weight_size))
    gc_params, bi_params = [], []
    for i in range(len(weight_size)):
        gc_params.append(linear_init(keys[2 * i], dims[i], dims[i + 1]))
        bi_params.append(linear_init(keys[2 * i + 1], dims[i], dims[i + 1]))

    u_g, i_g = ngcf_forward(adj, user_emb, item_emb, gc_params, bi_params, n_users)
    (u_g, i_g) = jax.block_until_ready((u_g, i_g))

    total_dim = embedding_dim + sum(weight_size)
    assert u_g.shape == (n_users, total_dim), u_g.shape
    assert i_g.shape == (n_items, total_dim), i_g.shape
    assert jnp.all(jnp.isfinite(u_g)) and jnp.all(jnp.isfinite(i_g))
    print("KERNEL_OK")
</pallas_src>

<mosaic_0001>
module attributes {stable_mosaic.version = 11 : i64} {
  func.func @ngcf_layer_kernel(%arg0: i32, %arg1: i32, %arg2: memref<1xi32, #tpu.memory_space<smem>>, %arg3: memref<1xi32, #tpu.memory_space<smem>>, %arg4: memref<128x128xbf16, #tpu.memory_space<vmem>>, %arg5: memref<128x128xbf16, #tpu.memory_space<vmem>>, %arg6: memref<128x128xbf16, #tpu.memory_space<vmem>>, %arg7: memref<128x128xbf16, #tpu.memory_space<vmem>>, %arg8: memref<1x128xf32, #tpu.memory_space<vmem>>, %arg9: memref<128x128xbf16, #tpu.memory_space<vmem>>, %arg10: memref<1x128xf32, #tpu.memory_space<vmem>>, %arg11: memref<128x128xbf16, #tpu.memory_space<vmem>>, %arg12: memref<128x128xbf16, #tpu.memory_space<vmem>>, %arg13: memref<128x128xf32, #tpu.memory_space<vmem>>) attributes {dimension_semantics = [#tpu.dimension_semantics<parallel>, #tpu.dimension_semantics<arbitrary>], iteration_bounds = array<i64: 1, 1>, scalar_prefetch = 2 : i64, scratch_operands = 1 : i64, tpu.core_type = #tpu.core_type<tc>, window_params = [{transform_indices = @transform_0, window_bounds = array<i64: 128, 128>}, {transform_indices = @transform_1, window_bounds = array<i64: 128, 128>}, {transform_indices = @transform_2, window_bounds = array<i64: 128, 128>}, {pipeline_mode = #tpu.pipeline_mode<synchronous>, transform_indices = @transform_3, window_bounds = array<i64: 128, 128>}, {pipeline_mode = #tpu.pipeline_mode<synchronous>, transform_indices = @transform_4, window_bounds = array<i64: 1, 128>}, {pipeline_mode = #tpu.pipeline_mode<synchronous>, transform_indices = @transform_5, window_bounds = array<i64: 128, 128>}, {pipeline_mode = #tpu.pipeline_mode<synchronous>, transform_indices = @transform_6, window_bounds = array<i64: 1, 128>}, {transform_indices = @transform_7, window_bounds = array<i64: 128, 128>}, {transform_indices = @transform_8, window_bounds = array<i64: 128, 128>}]} {
    %c0_i32 = arith.constant 0 : i32
    %0 = arith.cmpi eq, %arg1, %c0_i32 : i32
    %1 = arith.extui %0 : i1 to i32
    %c0_i32_0 = arith.constant 0 : i32
    %2 = arith.cmpi ne, %1, %c0_i32_0 : i32
    scf.if %2 {
      %cst = arith.constant 0.000000e+00 : f32
      %11 = vector.broadcast %cst : f32 to vector<128x128xf32>
      %c0 = arith.constant 0 : index
      %c0_4 = arith.constant 0 : index
      %12 = vector.load %arg13[%c0, %c0_4] : memref<128x128xf32, #tpu.memory_space<vmem>>, vector<128x128xf32>
      tpu.vector_store %arg13[%c0, %c0_4], %11 {strides = array<i32>} : memref<128x128xf32, #tpu.memory_space<vmem>>, vector<128x128xf32>,
    } else {
    }
    %3 = arith.index_cast %arg0 : i32 to index
    %4 = memref.load %arg3[%3] : memref<1xi32, #tpu.memory_space<smem>>
    %5 = arith.cmpi slt, %arg1, %4 : i32
    %6 = arith.extui %5 : i1 to i32
    %c0_i32_1 = arith.constant 0 : i32
    %7 = arith.cmpi ne, %6, %c0_i32_1 : i32
    scf.if %7 {
      %c0 = arith.constant 0 : index
      %c0_4 = arith.constant 0 : index
      %11 = vector.load %arg13[%c0, %c0_4] : memref<128x128xf32, #tpu.memory_space<vmem>>, vector<128x128xf32>
      %c0_5 = arith.constant 0 : index
      %c0_6 = arith.constant 0 : index
      %12 = vector.load %arg4[%c0_5, %c0_6] : memref<128x128xbf16, #tpu.memory_space<vmem>>, vector<128x128xbf16>
      %c0_7 = arith.constant 0 : index
      %c0_8 = arith.constant 0 : index
      %13 = vector.load %arg5[%c0_7, %c0_8] : memref<128x128xbf16, #tpu.memory_space<vmem>>, vector<128x128xbf16>
      %cst = arith.constant dense<0.000000e+00> : vector<128x128xf32>
      %14 = tpu.matmul %12, %13, %cst {dimension_numbers = #tpu.dot_dimension_numbers<[1], [0], [0], [1], [0, 0, 1, 1], [], []>} : vector<128x128xbf16>, vector<128x128xbf16>, vector<128x128xf32> -> vector<128x128xf32>
      %15 = arith.addf %11, %14 : vector<128x128xf32>
      %c0_9 = arith.constant 0 : index
      %c0_10 = arith.constant 0 : index
      %16 = vector.load %arg13[%c0_9, %c0_10] : memref<128x128xf32, #tpu.memory_space<vmem>>, vector<128x128xf32>
      tpu.vector_store %arg13[%c0_9, %c0_10], %15 {strides = array<i32>} : memref<128x128xf32, #tpu.memory_space<vmem>>, vector<128x128xf32>,
    } else {
    }
    %c0_i32_2 = arith.constant 0 : i32
    %8 = arith.cmpi eq, %arg1, %c0_i32_2 : i32
    %9 = arith.extui %8 : i1 to i32
    %c0_i32_3 = arith.constant 0 : i32
    %10 = arith.cmpi ne, %9, %c0_i32_3 : i32
    scf.if %10 {
      %c0 = arith.constant 0 : index
      %c0_4 = arith.constant 0 : index
      %11 = vector.load %arg13[%c0, %c0_4] : memref<128x128xf32, #tpu.memory_space<vmem>>, vector<128x128xf32>
      %12 = arith.truncf %11 : vector<128x128xf32> to vector<128x128xbf16>
      %c0_5 = arith.constant 0 : index
      %c0_6 = arith.constant 0 : index
      %13 = vector.load %arg7[%c0_5, %c0_6] : memref<128x128xbf16, #tpu.memory_space<vmem>>, vector<128x128xbf16>
      %cst = arith.constant dense<0.000000e+00> : vector<128x128xf32>
      %14 = tpu.matmul %12, %13, %cst {dimension_numbers = #tpu.dot_dimension_numbers<[1], [0], [0], [1], [0, 0, 1, 1], [], []>} : vector<128x128xbf16>, vector<128x128xbf16>, vector<128x128xf32> -> vector<128x128xf32>
      %c0_7 = arith.constant 0 : index
      %c0_8 = arith.constant 0 : index
      %15 = vector.load %arg8[%c0_7, %c0_8] : memref<1x128xf32, #tpu.memory_space<vmem>>, vector<1x128xf32>
      %16 = vector.broadcast %15 : vector<1x128xf32> to vector<128x128xf32>
      %17 = arith.addf %14, %16 : vector<128x128xf32>
      %cst_9 = arith.constant 0.000000e+00 : f32
      %18 = vector.broadcast %cst_9 : f32 to vector<128x128xf32>
      %19 = arith.cmpf oge, %17, %18 : vector<128x128xf32>
      %cst_10 = arith.constant 0.00999999977 : f32
      %20 = vector.broadcast %cst_10 : f32 to vector<128x128xf32>
      %21 = arith.mulf %20, %17 : vector<128x128xf32>
      %22 = arith.select %19, %17, %21 : vector<128x128xi1>, vector<128x128xf32>
      %c0_11 = arith.constant 0 : index
      %c0_12 = arith.constant 0 : index
      %23 = vector.load %arg6[%c0_11, %c0_12] : memref<128x128xbf16, #tpu.memory_space<vmem>>, vector<128x128xbf16>
      %24 = arith.extf %23 : vector<128x128xbf16> to vector<128x128xf32>
      %25 = arith.mulf %24, %11 : vector<128x128xf32>
      %26 = arith.truncf %25 : vector<128x128xf32> to vector<128x128xbf16>
      %c0_13 = arith.constant 0 : index
      %c0_14 = arith.constant 0 : index
      %27 = vector.load %arg9[%c0_13, %c0_14] : memref<128x128xbf16, #tpu.memory_space<vmem>>, vector<128x128xbf16>
      %cst_15 = arith.constant dense<0.000000e+00> : vector<128x128xf32>
      %28 = tpu.matmul %26, %27, %cst_15 {dimension_numbers = #tpu.dot_dimension_numbers<[1], [0], [0], [1], [0, 0, 1, 1], [], []>} : vector<128x128xbf16>, vector<128x128xbf16>, vector<128x128xf32> -> vector<128x128xf32>
      %c0_16 = arith.constant 0 : index
      %c0_17 = arith.constant 0 : index
      %29 = vector.load %arg10[%c0_16, %c0_17] : memref<1x128xf32, #tpu.memory_space<vmem>>, vector<1x128xf32>
      %30 = vector.broadcast %29 : vector<1x128xf32> to vector<128x128xf32>
      %31 = arith.addf %28, %30 : vector<128x128xf32>
      %cst_18 = arith.constant 0.000000e+00 : f32
      %32 = vector.broadcast %cst_18 : f32 to vector<128x128xf32>
      %33 = arith.cmpf oge, %31, %32 : vector<128x128xf32>
      %cst_19 = arith.constant 0.00999999977 : f32
      %34 = vector.broadcast %cst_19 : f32 to vector<128x128xf32>
      %35 = arith.mulf %34, %31 : vector<128x128xf32>
      %36 = arith.select %33, %31, %35 : vector<128x128xi1>, vector<128x128xf32>
      %37 = arith.addf %22, %36 : vector<128x128xf32>
      %38 = arith.truncf %37 : vector<128x128xf32> to vector<128x128xbf16>
      %c0_20 = arith.constant 0 : index
      %c0_21 = arith.constant 0 : index
      %39 = vector.load %arg11[%c0_20, %c0_21] : memref<128x128xbf16, #tpu.memory_space<vmem>>, vector<128x128xbf16>
      tpu.vector_store %arg11[%c0_20, %c0_21], %38 {strides = array<i32>} : memref<128x128xbf16, #tpu.memory_space<vmem>>, vector<128x128xbf16>,
      %40 = arith.mulf %37, %37 : vector<128x128xf32>
      %cst_22 = arith.constant dense<0.000000e+00> : vector<128xf32>
      %41 = vector.multi_reduction <add>, %40, %cst_22 [1] : vector<128x128xf32> to vector<128xf32>
      %42 = vector.shape_cast %41 : vector<128xf32> to vector<128x1xf32>
      %cst_23 = arith.constant 1.000000e-24 : f32
      %43 = vector.broadcast %cst_23 : f32 to vector<128x1xf32>
      %44 = arith.maximumf %42, %43 : vector<128x1xf32>
      %45 = math.rsqrt %44 : vector<128x1xf32>
      %46 = vector.broadcast %45 : vector<128x1xf32> to vector<128x128xf32>
      %47 = arith.mulf %37, %46 : vector<128x128xf32>
      %48 = arith.truncf %47 : vector<128x128xf32> to vector<128x128xbf16>
      %c0_24 = arith.constant 0 : index
      %c0_25 = arith.constant 0 : index
      %49 = vector.load %arg12[%c0_24, %c0_25] : memref<128x128xbf16, #tpu.memory_space<vmem>>, vector<128x128xbf16>
      tpu.vector_store %arg12[%c0_24, %c0_25], %48 {strides = array<i32>} : memref<128x128xbf16, #tpu.memory_space<vmem>>, vector<128x128xbf16>,
    } else {
    }
    return
  }
  func.func @transform_0(%arg0: i32, %arg1: i32, %arg2: memref<1xi32, #tpu.memory_space<smem>>, %arg3: memref<1xi32, #tpu.memory_space<smem>>) -> (i32, i32) {
    %c1_i32 = arith.constant 1 : i32
    %0 = arith.muli %arg0, %c1_i32 : i32
    %1 = arith.addi %0, %arg1 : i32
    %2 = arith.index_cast %1 : i32 to index
    %3 = memref.load %arg2[%2] : memref<1xi32, #tpu.memory_space<smem>>
    %c0_i32 = arith.constant 0 : i32
    return %arg0, %3 : i32, i32
  }
  func.func @transform_1(%arg0: i32, %arg1: i32, %arg2: memref<1xi32, #tpu.memory_space<smem>>, %arg3: memref<1xi32, #tpu.memory_space<smem>>) -> (i32, i32) {
    %c1_i32 = arith.constant 1 : i32
    %0 = arith.muli %arg0, %c1_i32 : i32
    %1 = arith.addi %0, %arg1 : i32
    %2 = arith.index_cast %1 : i32 to index
    %3 = memref.load %arg2[%2] : memref<1xi32, #tpu.memory_space<smem>>
    %c0_i32 = arith.constant 0 : i32
    %c0_i32_0 = arith.constant 0 : i32
    return %3, %c0_i32 : i32, i32
  }
  func.func @transform_2(%arg0: i32, %arg1: i32, %arg2: memref<1xi32, #tpu.memory_space<smem>>, %arg3: memref<1xi32, #tpu.memory_space<smem>>) -> (i32, i32) {
    %c0_i32 = arith.constant 0 : i32
    %c0_i32_0 = arith.constant 0 : i32
    return %arg0, %c0_i32 : i32, i32
  }
  func.func @transform_3(%arg0: i32, %arg1: i32, %arg2: memref<1xi32, #tpu.memory_space<smem>>, %arg3: memref<1xi32, #tpu.memory_space<smem>>) -> (i32, i32) {
    %c0_i32 = arith.constant 0 : i32
    %c0_i32_0 = arith.constant 0 : i32
    %c0_i32_1 = arith.constant 0 : i32
    return %c0_i32, %c0_i32_0 : i32, i32
  }
  func.func @transform_4(%arg0: i32, %arg1: i32, %arg2: memref<1xi32, #tpu.memory_space<smem>>, %arg3: memref<1xi32, #tpu.memory_space<smem>>) -> (i32, i32) {
    %c0_i32 = arith.constant 0 : i32
    %c0_i32_0 = arith.constant 0 : i32
    %c0_i32_1 = arith.constant 0 : i32
    return %c0_i32, %c0_i32_0 : i32, i32
  }
  func.func @transform_5(%arg0: i32, %arg1: i32, %arg2: memref<1xi32, #tpu.memory_space<smem>>, %arg3: memref<1xi32, #tpu.memory_space<smem>>) -> (i32, i32) {
    %c0_i32 = arith.constant 0 : i32
    %c0_i32_0 = arith.constant 0 : i32
    %c0_i32_1 = arith.constant 0 : i32
    return %c0_i32, %c0_i32_0 : i32, i32
  }
  func.func @transform_6(%arg0: i32, %arg1: i32, %arg2: memref<1xi32, #tpu.memory_space<smem>>, %arg3: memref<1xi32, #tpu.memory_space<smem>>) -> (i32, i32) {
    %c0_i32 = arith.constant 0 : i32
    %c0_i32_0 = arith.constant 0 : i32
    %c0_i32_1 = arith.constant 0 : i32
    return %c0_i32, %c0_i32_0 : i32, i32
  }
  func.func @transform_7(%arg0: i32, %arg1: i32, %arg2: memref<1xi32, #tpu.memory_space<smem>>, %arg3: memref<1xi32, #tpu.memory_space<smem>>) -> (i32, i32) {
    %c0_i32 = arith.constant 0 : i32
    %c0_i32_0 = arith.constant 0 : i32
    return %arg0, %c0_i32 : i32, i32
  }
  func.func @transform_8(%arg0: i32, %arg1: i32, %arg2: memref<1xi32, #tpu.memory_space<smem>>, %arg3: memref<1xi32, #tpu.memory_space<smem>>) -> (i32, i32) {
    %c0_i32 = arith.constant 0 : i32
    %c0_i32_0 = arith.constant 0 : i32
    return %arg0, %c0_i32 : i32, i32
  }
}

</mosaic_0001>

<bundles_post_ra>
// kernel: tpu_custom_call.1
= control target key start
LH: loop header
LB: loop body
LE: loop exit
PB: predicated region body
PF: predicated region fallthrough
CT: control target
= control target key end

     0   :  { %18 = vsyncpa [#allocation7], 0  ;;  %s2165_s0 = inlined_call_operand.<no memory space> [shape: s32[1], index: 0, kind: input, shape index: {}]   ;;  %s2166_s1 = inlined_call_operand.<no memory space> [shape: s32[1], index: 1, kind: input, shape index: {}]   ;;  %s2167_s2 = inlined_call_operand.hbm [shape: bf16[128,128], index: 2, kind: input, shape index: {}]   ;;  %s2168_s3 = inlined_call_operand.hbm [shape: bf16[128,128], index: 3, kind: input, shape index: {}]   ;;  %s2169_s4 = inlined_call_operand.hbm [shape: bf16[128,128], index: 4, kind: input, shape index: {}]   ;;  %s2170_s5 = inlined_call_operand.hbm [shape: bf16[128,128], index: 5, kind: input, shape index: {}]   ;;  %s2171_s6 = inlined_call_operand.vmem [shape: f32[1,128], index: 6, kind: input, shape index: {}]   ;;  %s2172_s7 = inlined_call_operand.hbm [shape: bf16[128,128], index: 7, kind: input, shape index: {}]   ;;  %s2173_s8 = inlined_call_operand.vmem [shape: f32[1,128], index: 8, kind: input, shape index: {}]   ;;  %s2174_s9 = inlined_call_operand.hbm [shape: bf16[128,128], index: 9, kind: output, shape index: {0}]   ;;  %s2175_s10 = inlined_call_operand.hbm [shape: bf16[128,128], index: 10, kind: output, shape index: {1}]  }
   0x1   :  { %19 = vsyncpa [#allocation10], 0 }
   0x2   :  { %20 = vsyncpa [#allocation13], 0 }
   0x3   :  { %21 = vsyncpa [#allocation8], 0 }
   0x4   :  { %22 = vsyncpa [#allocation17], 0  ;;  %s1312_s15 = sshll.u32 %s2165_s0, 10  ;;  %s1866_s19 = smov [#allocation9]  }
   0x5   :  { %s48_s18 = scalar_lea.hbm %s2168_s3, %s1312_s15  ;;  %s49_s20 = sshll.u32 %s1866_s19, 4  ;;  %s50_s20 = int_to_ptr.vmem [resolvable:$true] %s49_s20 }
   0x6   :  { %s1712_s21 = scalar_lea.hbm %s48_s18, 1024  ;;  %s1714_s24 = scalar_lea.hbm %s2168_s3, 1024 }
   0x7   :  { %p1713_p0 = scmp.ne.s32.totalorder %s48_s18, %s1712_s21  ;;  %p1715_p1 = scmp.lt.s32.totalorder %s48_s18, %s2168_s3 }
   0x8   :  { %p1716_p2 = scmp.lt.s32.totalorder %s1714_s24, %s1712_s21 }
   0xa   :  { %p1717_p3 = por %p1716_p2, %p1715_p1 }
   0xc   :  { %p1718_p4 = pnand %p1717_p3, %p1713_p0 }
   0xe   :  { %1721 = shalt.err (!%p1718_p4)
}
   0xf   :  { %s1722_s27 = scalar_lea.vmem %s50_s20, 1024  ;;  %p1727_p6 = scmp.lt.s32.totalorder %s50_s20, %s50_s20 }
  0x10   :  { %p1723_p5 = scmp.ne.s32.totalorder %s50_s20, %s1722_s27  ;;  %p1728_p7 = scmp.lt.s32.totalorder %s1722_s27, %s1722_s27 }
  0x12   :  { %p1729_p8 = por %p1728_p7, %p1727_p6 }
  0x14   :  { %p1730_p9 = pnand %p1729_p8, %p1723_p5 }
  0x16   :  { %1733 = shalt.err (!%p1730_p9)
}
  0x17   :  { %s1867_s28 = smov 64   ;;  %s1868_s29 = smov 4  }
  0x18   :  { %55 = dma.hbm_to_vmem [thread:$0]  %s48_s18, 1024, %s50_s20, [#allocation10], %s1867_s28, %s1867_s28, %s1868_s29  }
  0x19   :  { %s1869_s30 = smov [#allocation12]   ;;  %s1241_s13 = sshll.u32 %s2165_s0, 6 }
  0x1a   :  { %s73_s11 = sshll.u32 %s1869_s30, 4  ;;  %s1952_s16 = scalar_lea.hbm %s2167_s2, %s1241_s13  ;;  %s74_s11 = int_to_ptr.vmem [resolvable:$true] %s73_s11 }
  0x1b   :  { %s1742_s17 = scalar_lea.vmem %s74_s11, 1024  ;;  %p1747_p11 = scmp.lt.s32.totalorder %s74_s11, %s74_s11 }
  0x1c   :  { %p1743_p10 = scmp.ne.s32.totalorder %s74_s11, %s1742_s17  ;;  %p1748_p12 = scmp.lt.s32.totalorder %s1742_s17, %s1742_s17 }
  0x1e   :  { %p1749_p13 = por %p1748_p12, %p1747_p11 }
  0x20   :  { %p1750_p0 = pnand %p1749_p13, %p1743_p10 }
  0x22   :  { %1753 = shalt.err (!%p1750_p0)
}
  0x23   :  { %79 = dma.hbm_to_vmem [thread:$0]  %s2170_s5, 1024, %s74_s11, [#allocation13], %s1867_s28, %s1867_s28, %s1868_s29  }
  0x24   :  { %s1870_s0 = smov [#allocation6]   ;;  %s1871_s21 = smov [#allocation11]  }
  0x25   :  { %s32_s20 = sshll.u32 %s1870_s0, 4  ;;  %s61_s22 = sshll.u32 %s1871_s21, 4  ;;  %s33_s20 = int_to_ptr.vmem [resolvable:$true] %s32_s20  ;;  %s62_s22 = int_to_ptr.vmem [resolvable:$true] %s61_s22 }
  0x26   :  { %s1754_s23 = scalar_lea.hbm %s1952_s16, 1024  ;;  %s1756_s26 = scalar_lea.hbm %s2167_s2, 1024 }
  0x27   :  { %p1755_p1 = scmp.ne.s32.totalorder %s1952_s16, %s1754_s23  ;;  %p1757_p2 = scmp.lt.s32.totalorder %s1952_s16, %s2167_s2 }
  0x28   :  { %p1758_p3 = scmp.lt.s32.totalorder %s1756_s26, %s1754_s23 }
  0x2a   :  { %p1759_p4 = por %p1758_p3, %p1757_p2 }
  0x2c   :  { %p1760_p5 = pnand %p1759_p4, %p1755_p1 }
  0x2e   :  { %1763 = shalt.err (!%p1760_p5)
}
  0x2f   :  { %s1764_s5 = scalar_lea.vmem %s33_s20, 1024  ;;  %p1769_p7 = scmp.lt.s32.totalorder %s33_s20, %s33_s20 }
  0x30   :  { %p1765_p6 = scmp.ne.s32.totalorder %s33_s20, %s1764_s5  ;;  %p1770_p8 = scmp.lt.s32.totalorder %s1764_s5, %s1764_s5 }
  0x32   :  { %p1771_p9 = por %p1770_p8, %p1769_p7 }
  0x34   :  { %p1772_p10 = pnand %p1771_p9, %p1765_p6 }
  0x36   :  { %1775 = shalt.err (!%p1772_p10)
}
  0x37   :  { %38 = dma.hbm_to_vmem [thread:$0]  %s1952_s16, 1024, %s33_s20, [#allocation7], %s1867_s28, %s1867_s28, %s1868_s29  }
  0x38   :  { %s1784_s11 = scalar_lea.vmem %s62_s22, 1024  ;;  %p1789_p12 = scmp.lt.s32.totalorder %s62_s22, %s62_s22 }
  0x39   :  { %p1785_p11 = scmp.ne.s32.totalorder %s62_s22, %s1784_s11  ;;  %p1790_p13 = scmp.lt.s32.totalorder %s1784_s11, %s1784_s11 }
  0x3b   :  { %p1791_p0 = por %p1790_p13, %p1789_p12 }
  0x3d   :  { %p1792_p2 = pnand %p1791_p0, %p1785_p11 }
  0x3f   :  { %1795 = shalt.err (!%p1792_p2)
}
  0x40   :  { %67 = dma.hbm_to_vmem [thread:$0]  %s2169_s4, 1024, %s62_s22, [#allocation10], %s1867_s28, %s1867_s28, %s1868_s29  }
  0x41   :  { %s1872_s12 = smov [#allocation14]  }
  0x42   :  { %s87_s13 = sshll.u32 %s1872_s12, 4  ;;  %s88_s13 = int_to_ptr.vmem [resolvable:$true] %s87_s13 }
  0x43   :  { %s1804_s14 = scalar_lea.vmem %s88_s13, 1024  ;;  %p1809_p3 = scmp.lt.s32.totalorder %s88_s13, %s88_s13 }
  0x44   :  { %p1805_p1 = scmp.ne.s32.totalorder %s88_s13, %s1804_s14  ;;  %p1810_p4 = scmp.lt.s32.totalorder %s1804_s14, %s1804_s14 }
  0x46   :  { %p1811_p5 = por %p1810_p4, %p1809_p3 }
  0x48   :  { %p1812_p6 = pnand %p1811_p5, %p1805_p1 }
  0x4a   :  { %1815 = shalt.err (!%p1812_p6)
}
  0x4b   :  { %93 = dma.hbm_to_vmem [thread:$0]  %s2172_s7, 1024, %s88_s13, [#allocation13], %s1867_s28, %s1867_s28, %s1868_s29  }
  0x4c   :  { %1856 = dma.done.wait [#allocation7], 1024  }
  0x4d   :  { %1857 = vsyncadd [#allocation7], 4294966272 }
  0x4e   :  { %1858 = dma.done.wait [#allocation10], 2048  }
  0x4f   :  { %1859 = vsyncadd [#allocation10], 4294965248 }
  0x50   :  { %1860 = dma.done.wait [#allocation13], 2048  }
  0x51   :  { %1861 = vsyncadd [#allocation13], 4294965248  ;;  %v1873_v0 = vmov 0.0   ;;  %p1245_p7 = scmp.le.s32.totalorder %s2166_s1, 0 }
  0x52   :  { %121 = vst [vmem:[#allocation2 + $0x30] sm:$0xff] %v1873_v0  ;;  %122 = vst [vmem:[#allocation2] sm:$0xff] %v1873_v0 }
  0x53   :  { %123 = vst [vmem:[#allocation2 + $0x58] sm:$0xff] %v1873_v0  ;;  %124 = vst [vmem:[#allocation2 + $0x18] sm:$0xff] %v1873_v0 }
  0x54   :  { %125 = vst [vmem:[#allocation2 + $0x50] sm:$0xff] %v1873_v0  ;;  %126 = vst [vmem:[#allocation2 + $0x68] sm:$0xff] %v1873_v0 }
  0x55   :  { %127 = vst [vmem:[#allocation2 + $0x8] sm:$0xff] %v1873_v0  ;;  %128 = vst [vmem:[#allocation2 + $0x48] sm:$0xff] %v1873_v0  ;;  %141 = sbr.rel (%p1245_p7) target bundleno = 333 (0x14d), region = 57 }
  0x56   :  { %129 = vst [vmem:[#allocation2 + $0x40] sm:$0xff] %v1873_v0  ;;  %130 = vst [vmem:[#allocation2 + $0x20] sm:$0xff] %v1873_v0 }
  0x57   :  { %131 = vst [vmem:[#allocation2 + $0x10] sm:$0xff] %v1873_v0  ;;  %132 = vst [vmem:[#allocation2 + $0x38] sm:$0xff] %v1873_v0 }
  0x58   :  { %133 = vst [vmem:[#allocation2 + $0x60] sm:$0xff] %v1873_v0  ;;  %134 = vst [vmem:[#allocation2 + $0x70] sm:$0xff] %v1873_v0 }
  0x59   :  { %135 = vst [vmem:[#allocation2 + $0x78] sm:$0xff] %v1873_v0  ;;  %136 = vst [vmem:[#allocation2 + $0x28] sm:$0xff] %v1873_v0 }
  0x5a   :  { %v1648_v1 = vld [vmem:[#allocation9 + $0x38] sm:$0xff]   ;;  %v1649_v2 = vld [vmem:[#allocation9 + $0x30] sm:$0xff]   ;;  %v1650_v3 = vld [vmem:[#allocation9 + $0x28] sm:$0xff]  }
  0x5b   :  { %1526 = vmatprep.subr.bf16.mxu0 %v1648_v1  ;;  %1622 = vmatprep.subr.bf16.mxu1 %v1648_v1  ;;  %v1651_v4 = vld [vmem:[#allocation9 + $0x20] sm:$0xff]   ;;  %v1652_v7 = vld [vmem:[#allocation9 + $0x18] sm:$0xff]   ;;  %v1653_v8 = vld [vmem:[#allocation9 + $0x10] sm:$0xff]  }
  0x5c   :  { %1527 = vmatpush3.bf16.msra.mxu0 %v1648_v1  ;;  %1630 = vmatpush3.bf16.msra.mxu1 %v1648_v1  ;;  %v1656_v5 = vld [vmem:[#allocation6] sm:$0xff]   ;;  %v1654_v9 = vld [vmem:[#allocation9 + $0x8] sm:$0xff]   ;;  %v1660_v13 = vld [vmem:[#allocation6 + $0x10] sm:$0xff]  }
  0x5d   :  { %1528 = vmatprep.subr.bf16.mxu0 %v1649_v2  ;;  %1623 = vmatprep.subr.bf16.mxu1 %v1649_v2  ;;  %v1657_v6 = vld [vmem:[#allocation6 + $0x20] sm:$0xff]   ;;  %v1658_v11 = vld [vmem:[#allocation6 + $0x8] sm:$0xff]   ;;  %v1661_v14 = vld [vmem:[#allocation6 + $0x30] sm:$0xff]  }
  0x5e   :  { %1542 = vmatprep.mubr.bf16.mxu0 %v1656_v5  ;;  %1550 = vmatprep.mubr.bf16.mxu1 %v1657_v6  ;;  %v1655_v10 = vld [vmem:[#allocation9] sm:$0xff]   ;;  %v1659_v12 = vld [vmem:[#allocation6 + $0x28] sm:$0xff]   ;;  %v1662_v15 = vld [vmem:[#allocation6 + $0x18] sm:$0xff]  }
  0x5f   :  { %v1663_v16 = vld [vmem:[#allocation6 + $0x38] sm:$0xff]   ;;  %v152_v18 = vld [vmem:[#allocation2 + $0x10] sm:$0xff]  ;;  %v150_v22 = vld [vmem:[#allocation2 + $0x40] sm:$0xff] }
  0x60   :  { %1529 = vmatpush3.bf16.msra.mxu0 %v1649_v2  ;;  %1631 = vmatpush3.bf16.msra.mxu1 %v1649_v2  ;;  %v144_v17 = vld [vmem:[#allocation2 + $0x58] sm:$0xff]  ;;  %v142_v21 = vld [vmem:[#allocation2 + $0x30] sm:$0xff]  ;;  %v143_v33 = vld [vmem:[#allocation2] sm:$0xff] }
  0x61   :  { %1530 = vmatprep.subr.bf16.mxu0 %v1650_v3  ;;  %1624 = vmatprep.subr.bf16.mxu1 %v1650_v3  ;;  %v145_v27 = vld [vmem:[#allocation2 + $0x18] sm:$0xff]  ;;  %v151_v34 = vld [vmem:[#allocation2 + $0x20] sm:$0xff]  ;;  %v148_v39 = vld [vmem:[#allocation2 + $0x8] sm:$0xff] }
  0x62   :  { %v153_v28 = vld [vmem:[#allocation2 + $0x38] sm:$0xff]  ;;  %v146_v45 = vld [vmem:[#allocation2 + $0x50] sm:$0xff]  ;;  %v154_v46 = vld [vmem:[#allocation2 + $0x60] sm:$0xff] }
  0x63   :  { %v156_v40 = vld [vmem:[#allocation2 + $0x78] sm:$0xff]  ;;  %v149_v51 = vld [vmem:[#allocation2 + $0x48] sm:$0xff]  ;;  %v155_v58 = vld [vmem:[#allocation2 + $0x70] sm:$0xff] }
  0x64   :  { %1531 = vmatpush3.bf16.msra.mxu0 %v1650_v3  ;;  %1632 = vmatpush3.bf16.msra.mxu1 %v1650_v3  ;;  %v157_v52 = vld [vmem:[#allocation2 + $0x28] sm:$0xff] }
  0x65   :  { %1532 = vmatprep.subr.bf16.mxu0 %v1651_v4  ;;  %1625 = vmatprep.subr.bf16.mxu1 %v1651_v4  ;;  %v147_v57 = vld [vmem:[#allocation2 + $0x68] sm:$0xff] }
  0x68   :  { %1533 = vmatpush3.bf16.msra.mxu0 %v1651_v4  ;;  %1633 = vmatpush3.bf16.msra.mxu1 %v1651_v4 }
  0x69   :  { %1534 = vmatprep.subr.bf16.mxu0 %v1652_v7  ;;  %1626 = vmatprep.subr.bf16.mxu1 %v1652_v7 }
  0x6c   :  { %1535 = vmatpush3.bf16.msra.mxu0 %v1652_v7  ;;  %1634 = vmatpush3.bf16.msra.mxu1 %v1652_v7 }
  0x6d   :  { %1536 = vmatprep.subr.bf16.mxu0 %v1653_v8  ;;  %1627 = vmatprep.subr.bf16.mxu1 %v1653_v8 }
  0x70   :  { %1537 = vmatpush3.bf16.msra.mxu0 %v1653_v8  ;;  %1635 = vmatpush3.bf16.msra.mxu1 %v1653_v8 }
  0x71   :  { %1538 = vmatprep.subr.bf16.mxu0 %v1654_v9  ;;  %1628 = vmatprep.subr.bf16.mxu1 %v1654_v9 }
  0x74   :  { %1539 = vmatpush3.bf16.msra.mxu0 %v1654_v9  ;;  %1636 = vmatpush3.bf16.msra.mxu1 %v1654_v9 }
  0x75   :  { %1540 = vmatprep.subr.bf16.mxu0 %v1655_v10  ;;  %1629 = vmatprep.subr.bf16.mxu1 %v1655_v10 }
  0x78   :  { %1541 = vmatpush3.bf16.msra.mxu0 %v1655_v10  ;;  %1637 = vmatpush3.bf16.msra.mxu1 %v1655_v10 }
  0x7b   :  { %1543 = vmatmul.mubr.bf16.vlgmr.msra.gmra.mxu0 %v1658_v11  ;;  %1551 = vmatmul.mubr.bf16.vlgmr.msra.gmra.mxu1 %v1659_v12 }
  0x7c   :  { %1546 = vmatprep.mubr.bf16.mxu0 %v1660_v13  ;;  %1554 = vmatprep.mubr.bf16.mxu1 %v1661_v14 }
  0x83   :  { %1547 = vmatmul.mubr.bf16.gmra.mxu0 %v1662_v15  ;;  %1555 = vmatmul.mubr.bf16.gmra.mxu1 %v1663_v16 }
 0x13b   :  { %v1544_v19 = vpop.f32.mrf.mxu0  ;;  %v1552_v20 = vpop.f32.mrf.mxu1 }
 0x13c   :  { %v385_v23 = vadd.f32 %v1544_v19, %v144_v17  ;;  %v393_v24 = vadd.f32 %v1552_v20, %v152_v18 }
 0x13d   :  { %v320_v25 = vpop.f32.mrf.mxu0  ;;  %v352_v26 = vpop.f32.mrf.mxu1 }
 0x13e   :  { %401 = vst [vmem:[#allocation2 + $0x58] sm:$0xff] %v385_v23  ;;  %409 = vst [vmem:[#allocation2 + $0x10] sm:$0xff] %v393_v24  ;;  %v383_v29 = vadd.f32 %v320_v25, %v142_v21  ;;  %v391_v30 = vadd.f32 %v352_v26, %v150_v22 }
 0x13f   :  { %v1545_v31 = vpop.f32.mrf.mxu0  ;;  %v1553_v32 = vpop.f32.mrf.mxu1 }
 0x140   :  { %399 = vst [vmem:[#allocation2 + $0x30] sm:$0xff] %v383_v29  ;;  %407 = vst [vmem:[#allocation2 + $0x40] sm:$0xff] %v391_v30  ;;  %v386_v35 = vadd.f32 %v1545_v31, %v145_v27  ;;  %v394_v36 = vadd.f32 %v1553_v32, %v153_v28 }
 0x141   :  { %v323_v37 = vpop.f32.mrf.mxu0  ;;  %v355_v38 = vpop.f32.mrf.mxu1 }
 0x142   :  { %402 = vst [vmem:[#allocation2 + $0x18] sm:$0xff] %v386_v35  ;;  %410 = vst [vmem:[#allocation2 + $0x38] sm:$0xff] %v394_v36  ;;  %v384_v41 = vadd.f32 %v323_v37, %v143_v33  ;;  %v392_v42 = vadd.f32 %v355_v38, %v151_v34 }
 0x143   :  { %v1548_v43 = vpop.f32.mrf.mxu0  ;;  %v1556_v44 = vpop.f32.mrf.mxu1 }
 0x144   :  { %400 = vst [vmem:[#allocation2] sm:$0xff] %v384_v41  ;;  %408 = vst [vmem:[#allocation2 + $0x20] sm:$0xff] %v392_v42  ;;  %v389_v47 = vadd.f32 %v1548_v43, %v148_v39  ;;  %v397_v48 = vadd.f32 %v1556_v44, %v156_v40 }
 0x145   :  { %v336_v49 = vpop.f32.mrf.mxu0  ;;  %v368_v50 = vpop.f32.mrf.mxu1 }
 0x146   :  { %405 = vst [vmem:[#allocation2 + $0x8] sm:$0xff] %v389_v47  ;;  %413 = vst [vmem:[#allocation2 + $0x78] sm:$0xff] %v397_v48  ;;  %v387_v53 = vadd.f32 %v336_v49, %v146_v45  ;;  %v395_v54 = vadd.f32 %v368_v50, %v154_v46 }
 0x147   :  { %v1549_v55 = vpop.f32.mrf.mxu0  ;;  %v1557_v56 = vpop.f32.mrf.mxu1 }
 0x148   :  { %403 = vst [vmem:[#allocation2 + $0x50] sm:$0xff] %v387_v53  ;;  %411 = vst [vmem:[#allocation2 + $0x60] sm:$0xff] %v395_v54  ;;  %v390_v59 = vadd.f32 %v1549_v55, %v149_v51  ;;  %v398_v60 = vadd.f32 %v1557_v56, %v157_v52 }
 0x149   :  { %v339_v61 = vpop.f32.mrf.mxu0  ;;  %v371_v62 = vpop.f32.mrf.mxu1 }
 0x14a   :  { %406 = vst [vmem:[#allocation2 + $0x48] sm:$0xff] %v390_v59  ;;  %414 = vst [vmem:[#allocation2 + $0x28] sm:$0xff] %v398_v60  ;;  %v388_v63 = vadd.f32 %v339_v61, %v147_v57  ;;  %v396_v0 = vadd.f32 %v371_v62, %v155_v58 }
 0x14c   :  { %404 = vst [vmem:[#allocation2 + $0x68] sm:$0xff] %v388_v63  ;;  %412 = vst [vmem:[#allocation2 + $0x70] sm:$0xff] %v396_v0 }
 0x14d PF:  { %v1664_v1 = vld [vmem:[#allocation12 + $0x38] sm:$0xff]   ;;  %v1666_v3 = vld [vmem:[#allocation12 + $0x30] sm:$0xff]   ;;  %v1668_v5 = vld [vmem:[#allocation12 + $0x28] sm:$0xff]  }
 0x14e   :  { %v1665_v2 = vld [vmem:[#allocation14 + $0x38] sm:$0xff]   ;;  %1558 = vmatprep.subr.bf16.mxu0 %v1664_v1  ;;  %v1667_v4 = vld [vmem:[#allocation14 + $0x30] sm:$0xff]   ;;  %v1669_v6 = vld [vmem:[#allocation14 + $0x28] sm:$0xff]  }
 0x14f   :  { %1590 = vmatprep.subr.bf16.mxu1 %v1665_v2  ;;  %1559 = vmatpush3.bf16.msra.mxu0 %v1664_v1  ;;  %v1670_v7 = vld [vmem:[#allocation12 + $0x20] sm:$0xff]   ;;  %v1672_v9 = vld [vmem:[#allocation12 + $0x18] sm:$0xff]   ;;  %v1674_v11 = vld [vmem:[#allocation12 + $0x10] sm:$0xff]  }
 0x150   :  { %1591 = vmatpush3.bf16.msra.mxu1 %v1665_v2  ;;  %1560 = vmatprep.subr.bf16.mxu0 %v1666_v3  ;;  %v1671_v8 = vld [vmem:[#allocation14 + $0x20] sm:$0xff]   ;;  %v1673_v10 = vld [vmem:[#allocation14 + $0x18] sm:$0xff]   ;;  %v418_v12 = vld [vmem:[#allocation2 + $0x30] sm:$0xff] }
 0x151   :  { %1592 = vmatprep.subr.bf16.mxu1 %v1667_v4  ;;  %v419_v13 = vld [vmem:[#allocation2] sm:$0xff]  ;;  %v1675_v15 = vld [vmem:[#allocation14 + $0x10] sm:$0xff]   ;;  %v1676_v21 = vld [vmem:[#allocation12 + $0x8] sm:$0xff]  }
 0x152   :  { %v1346_v14 = vld [vmem:[#allocation11] sm:$0xff]   ;;  %v434_v16 = vpack.c.bf16 %v419_v13, %v418_v12  ;;  %v1457_v22 = vld [vmem:[#allocation11 + $0x8] sm:$0xff]   ;;  %v1458_v25 = vld [vmem:[#allocation11 + $0x10] sm:$0xff]  }
 0x153   :  { %1561 = vmatpush3.bf16.msra.mxu0 %v1666_v3  ;;  %v1347_v17 = vunpack.c.l.bf16 %v1346_v14  ;;  %v1348_v18 = vunpack.c.h.bf16 %v1346_v14  ;;  %v1677_v23 = vld [vmem:[#allocation14 + $0x8] sm:$0xff]   ;;  %v1351_v26 = vunpack.c.l.bf16 %v1457_v22  ;;  %v1352_v27 = vunpack.c.h.bf16 %v1457_v22  ;;  %v1678_v28 = vld [vmem:[#allocation12] sm:$0xff]   ;;  %v420_v29 = vld [vmem:[#allocation2 + $0x58] sm:$0xff] }
 0x154   :  { %1593 = vmatpush3.bf16.msra.mxu1 %v1667_v4  ;;  %1562 = vmatprep.subr.bf16.mxu0 %v1668_v5  ;;  %v421_v30 = vld [vmem:[#allocation2 + $0x18] sm:$0xff]  ;;  %v1355_v31 = vunpack.c.l.bf16 %v1458_v25  ;;  %v1356_v32 = vunpack.c.h.bf16 %v1458_v25  ;;  %v1679_v33 = vld [vmem:[#allocation14] sm:$0xff]   ;;  %v422_v34 = vld [vmem:[#allocation2 + $0x50] sm:$0xff] }
 0x155   :  { %1594 = vmatprep.subr.bf16.mxu1 %v1669_v6  ;;  %1574 = vmatprep.mubr.bf16.mxu0 %v434_v16  ;;  %v690_v19 = vmul.f32 %v1347_v17, %v418_v12  ;;  %v691_v20 = vmul.f32 %v1348_v18, %v419_v13  ;;  %v423_v35 = vld [vmem:[#allocation2 + $0x68] sm:$0xff]  ;;  %v692_v36 = vmul.f32 %v1351_v26, %v420_v29  ;;  %v1459_v40 = vld [vmem:[#allocation11 + $0x18] sm:$0xff]   ;;  %v1460_v41 = vld [vmem:[#allocation11 + $0x20] sm:$0xff]  }
 0x156   :  { %v693_v37 = vmul.f32 %v1352_v27, %v421_v30  ;;  %v694_v38 = vmul.f32 %v1355_v31, %v422_v34  ;;  %v695_v39 = vmul.f32 %v1356_v32, %v423_v35  ;;  %v435_v42 = vpack.c.bf16 %v421_v30, %v420_v29  ;;  %v424_v48 = vld [vmem:[#allocation2 + $0x8] sm:$0xff]  ;;  %v426_v52 = vld [vmem:[#allocation2 + $0x40] sm:$0xff]  ;;  %v1462_v59 = vld [vmem:[#allocation11 + $0x30] sm:$0xff]  }
 0x157   :  { %1563 = vmatpush3.bf16.msra.mxu0 %v1668_v5  ;;  %v706_v24 = vpack.c.bf16 %v691_v20, %v690_v19  ;;  %v436_v44 = vpack.c.bf16 %v423_v35, %v422_v34  ;;  %v1359_v45 = vunpack.c.l.bf16 %v1459_v40  ;;  %v1360_v46 = vunpack.c.h.bf16 %v1459_v40  ;;  %v425_v49 = vld [vmem:[#allocation2 + $0x48] sm:$0xff]  ;;  %v427_v53 = vld [vmem:[#allocation2 + $0x20] sm:$0xff]  ;;  %v428_v2 = vld [vmem:[#allocation2 + $0x10] sm:$0xff] }
 0x158   :  { %1595 = vmatpush3.bf16.msra.mxu1 %v1669_v6  ;;  %1564 = vmatprep.subr.bf16.mxu0 %v1670_v7  ;;  %v707_v43 = vpack.c.bf16 %v693_v37, %v692_v36  ;;  %v708_v47 = vpack.c.bf16 %v695_v39, %v694_v38  ;;  %v1363_v50 = vunpack.c.l.bf16 %v1460_v41  ;;  %v1364_v51 = vunpack.c.h.bf16 %v1460_v41  ;;  %v1461_v58 = vld [vmem:[#allocation11 + $0x28] sm:$0xff]   ;;  %v429_v3 = vld [vmem:[#allocation2 + $0x38] sm:$0xff]  ;;  %v430_v6 = vld [vmem:[#allocation2 + $0x60] sm:$0xff] }
 0x159   :  { %1596 = vmatprep.subr.bf16.mxu1 %v1671_v8  ;;  %1606 = vmatprep.mubr.bf16.mxu1 %v706_v24  ;;  %v696_v54 = vmul.f32 %v1359_v45, %v424_v48  ;;  %v697_v55 = vmul.f32 %v1360_v46, %v425_v49  ;;  %v437_v60 = vpack.c.bf16 %v425_v49, %v424_v48  ;;  %v1367_v63 = vunpack.c.l.bf16 %v1461_v58  ;;  %v1463_v12 = vld [vmem:[#allocation11 + $0x38] sm:$0xff]   ;;  %v433_v20 = vld [vmem:[#allocation2 + $0x28] sm:$0xff]  ;;  %v1991_v25 = vld [vmem:[%s2171_s6] ss:$0 sm:$0xff]  ;;  %s1874_s6 = smov [#allocation15]  }
 0x15a   :  { %v698_v56 = vmul.f32 %v1363_v50, %v426_v52  ;;  %v699_v57 = vmul.f32 %v1364_v51, %v427_v53  ;;  %v438_v62 = vpack.c.bf16 %v427_v53, %v426_v52  ;;  %v1368_v0 = vunpack.c.h.bf16 %v1461_v58  ;;  %v432_v19 = vld [vmem:[#allocation2 + $0x78] sm:$0xff]  ;;  %v1996_v26 = vld [vmem:[%s2173_s8] ss:$0 sm:$0xff]  ;;  %s1207_s8 = sshll.u32 %s1874_s6, 4  ;;  %s1208_s8 = int_to_ptr.vmem [resolvable:$true] %s1207_s8 }
 0x15b   :  { %1565 = vmatpush3.bf16.msra.mxu0 %v1670_v7  ;;  %v709_v61 = vpack.c.bf16 %v697_v55, %v696_v54  ;;  %v1371_v4 = vunpack.c.l.bf16 %v1462_v59  ;;  %v1372_v5 = vunpack.c.h.bf16 %v1462_v59  ;;  %v431_v7 = vld [vmem:[#allocation2 + $0x70] sm:$0xff]  ;;  %v439_v13 = vpack.c.bf16 %v429_v3, %v428_v2  ;;  %s1816_s0 = scalar_lea.vmem %s1208_s8, 1024  ;;  %p1821_p9 = scmp.lt.s32.totalorder %s1208_s8, %s1208_s8 }
 0x15c   :  { %1597 = vmatpush3.bf16.msra.mxu1 %v1671_v8  ;;  %1566 = vmatprep.subr.bf16.mxu0 %v1672_v9  ;;  %v710_v1 = vpack.c.bf16 %v699_v57, %v698_v56  ;;  %v700_v8 = vmul.f32 %v1367_v63, %v428_v2  ;;  %v1375_v16 = vunpack.c.l.bf16 %v1463_v12  ;;  %v1376_v17 = vunpack.c.h.bf16 %v1463_v12  ;;  %p1817_p8 = scmp.ne.s32.totalorder %s1208_s8, %s1816_s0  ;;  %p1822_p10 = scmp.lt.s32.totalorder %s1816_s0, %s1816_s0 }
 0x15d   :  { %1598 = vmatprep.subr.bf16.mxu1 %v1673_v10 }
 0x15e   :  { %v705_v22 = vmul.f32 %v1376_v17, %v433_v20  ;;  %p1823_p11 = por %p1822_p10, %p1821_p9 }
 0x15f   :  { %1567 = vmatpush3.bf16.msra.mxu0 %v1672_v9  ;;  %v701_v9 = vmul.f32 %v1368_v0, %v429_v3 }
 0x160   :  { %1599 = vmatpush3.bf16.msra.mxu1 %v1673_v10  ;;  %1568 = vmatprep.subr.bf16.mxu0 %v1674_v11  ;;  %v702_v10 = vmul.f32 %v1371_v4, %v430_v6  ;;  %p1824_p12 = pnand %p1823_p11, %p1817_p8 }
 0x161   :  { %1600 = vmatprep.subr.bf16.mxu1 %v1675_v15  ;;  %v711_v14 = vpack.c.bf16 %v701_v9, %v700_v8 }
 0x163   :  { %1569 = vmatpush3.bf16.msra.mxu0 %v1674_v11  ;;  %v703_v11 = vmul.f32 %v1372_v5, %v431_v7 }
 0x164   :  { %1601 = vmatpush3.bf16.msra.mxu1 %v1675_v15  ;;  %1570 = vmatprep.subr.bf16.mxu0 %v1676_v21  ;;  %v440_v15 = vpack.c.bf16 %v431_v7, %v430_v6 }
 0x165   :  { %1602 = vmatprep.subr.bf16.mxu1 %v1677_v23  ;;  %v712_v18 = vpack.c.bf16 %v703_v11, %v702_v10 }
 0x167   :  { %1571 = vmatpush3.bf16.msra.mxu0 %v1676_v21  ;;  %v704_v21 = vmul.f32 %v1375_v16, %v432_v19 }
 0x168   :  { %1603 = vmatpush3.bf16.msra.mxu1 %v1677_v23  ;;  %1572 = vmatprep.subr.bf16.mxu0 %v1678_v28  ;;  %v441_v23 = vpack.c.bf16 %v433_v20, %v432_v19 }
 0x169   :  { %1604 = vmatprep.subr.bf16.mxu1 %v1679_v33  ;;  %v713_v24 = vpack.c.bf16 %v705_v22, %v704_v21 }
 0x16b   :  { %1573 = vmatpush3.bf16.msra.mxu0 %v1678_v28 }
 0x16c   :  { %1605 = vmatpush3.bf16.msra.mxu1 %v1679_v33 }
 0x16e   :  { %1575 = vmatmul.mubr.bf16.vlgmr.msra.gmra.mxu0 %v435_v42 }
 0x16f   :  { %1607 = vmatmul.mubr.bf16.vlgmr.msra.gmra.mxu1 %v707_v43  ;;  %1578 = vmatprep.mubr.bf16.mxu0 %v436_v44 }
 0x170   :  { %1610 = vmatprep.mubr.bf16.mxu1 %v708_v47 }
 0x176   :  { %1579 = vmatmul.mubr.bf16.gmra.mxu0 %v437_v60 }
 0x177   :  { %1611 = vmatmul.mubr.bf16.gmra.mxu1 %v709_v61  ;;  %1582 = vmatprep.mubr.bf16.mxu0 %v438_v62 }
 0x178   :  { %1614 = vmatprep.mubr.bf16.mxu1 %v710_v1 }
 0x17e   :  { %1583 = vmatmul.mubr.bf16.gmra.mxu0 %v439_v13 }
 0x17f   :  { %1615 = vmatmul.mubr.bf16.gmra.mxu1 %v711_v14  ;;  %1586 = vmatprep.mubr.bf16.mxu0 %v440_v15 }
 0x180   :  { %1618 = vmatprep.mubr.bf16.mxu1 %v712_v18 }
 0x186   :  { %1587 = vmatmul.mubr.bf16.gmra.mxu0 %v441_v23 }
 0x187   :  { %1619 = vmatmul.mubr.bf16.gmra.mxu1 %v713_v24 }
 0x22e   :  { %v1576_v27 = vpop.f32.mrf.mxu0 }
 0x22f   :  { %v556_v28 = vadd.f32 %v1576_v27, %v1991_v25  ;;  %v1608_v29 = vpop.f32.mrf.mxu1 }
 0x230   :  { %v828_v30 = vadd.f32 %v1608_v29, %v1996_v26  ;;  %v547_v31 = vpop.f32.mrf.mxu0 }
 0x231   :  { %vm612_vm0 = vcmp.ge.f32.partialorder %v556_v28, 0.0  ;;  %v628_v32 = vmul.f32 0.01, %v556_v28  ;;  %v548_v33 = vadd.f32 %v1991_v25, %v547_v31  ;;  %v819_v34 = vpop.f32.mrf.mxu1 }
 0x232   :  { %vm884_vm1 = vcmp.ge.f32.partialorder %v828_v30, 0.0  ;;  %v900_v35 = vmul.f32 0.01, %v828_v30  ;;  %v820_v36 = vadd.f32 %v1996_v26, %v819_v34  ;;  %v1577_v37 = vpop.f32.mrf.mxu0 }
 0x233   :  { %v644_v38 = vsel %vm612_vm0, %v556_v28, %v628_v32  ;;  %vm610_vm2 = vcmp.ge.f32.partialorder %v548_v33, 0.0  ;;  %v626_v39 = vmul.f32 0.01, %v548_v33  ;;  %v559_v40 = vadd.f32 %v1577_v37, %v1991_v25  ;;  %v1609_v41 = vpop.f32.mrf.mxu1 }
 0x234   :  { %v916_v42 = vsel %vm884_vm1, %v828_v30, %v900_v35  ;;  %vm882_vm3 = vcmp.ge.f32.partialorder %v820_v36, 0.0  ;;  %v898_v43 = vmul.f32 0.01, %v820_v36  ;;  %v831_v44 = vadd.f32 %v1609_v41, %v1996_v26  ;;  %v550_v45 = vpop.f32.mrf.mxu0 }
 0x235   :  { %v642_v46 = vsel %vm610_vm2, %v548_v33, %v626_v39  ;;  %vm613_vm4 = vcmp.ge.f32.partialorder %v559_v40, 0.0  ;;  %v629_v47 = vmul.f32 0.01, %v559_v40  ;;  %v551_v48 = vadd.f32 %v1991_v25, %v550_v45  ;;  %v822_v49 = vpop.f32.mrf.mxu1 }
 0x236   :  { %v914_v50 = vsel %vm882_vm3, %v820_v36, %v898_v43  ;;  %vm885_vm5 = vcmp.ge.f32.partialorder %v831_v44, 0.0  ;;  %v901_v51 = vmul.f32 0.01, %v831_v44  ;;  %v823_v52 = vadd.f32 %v1996_v26, %v822_v49  ;;  %v1580_v53 = vpop.f32.mrf.mxu0 }
 0x237   :  { %v645_v54 = vsel %vm613_vm4, %v559_v40, %v629_v47  ;;  %vm611_vm6 = vcmp.ge.f32.partialorder %v551_v48, 0.0  ;;  %v627_v55 = vmul.f32 0.01, %v551_v48  ;;  %v572_v56 = vadd.f32 %v1580_v53, %v1991_v25  ;;  %v1612_v57 = vpop.f32.mrf.mxu1 }
 0x238   :  { %v917_v58 = vsel %vm885_vm5, %v831_v44, %v901_v51  ;;  %vm883_vm7 = vcmp.ge.f32.partialorder %v823_v52, 0.0  ;;  %v899_v59 = vmul.f32 0.01, %v823_v52  ;;  %v844_v60 = vadd.f32 %v1612_v57, %v1996_v26  ;;  %v563_v61 = vpop.f32.mrf.mxu0 }
 0x239   :  { %v643_v62 = vsel %vm611_vm6, %v551_v48, %v627_v55  ;;  %vm616_vm8 = vcmp.ge.f32.partialorder %v572_v56, 0.0  ;;  %v632_v63 = vmul.f32 0.01, %v572_v56  ;;  %v835_v0 = vpop.f32.mrf.mxu1  ;;  %v2008_v1 = vadd.f32 %v916_v42, %v644_v38 }
 0x23a   :  { %v915_v2 = vsel %vm883_vm7, %v823_v52, %v899_v59  ;;  %vm888_vm9 = vcmp.ge.f32.partialorder %v844_v60, 0.0  ;;  %v904_v3 = vmul.f32 0.01, %v844_v60  ;;  %v836_v4 = vadd.f32 %v1996_v26, %v835_v0  ;;  %v1581_v5 = vpop.f32.mrf.mxu0 }
 0x23b   :  { %v2011_v6 = vsel %vm616_vm8, %v572_v56, %v632_v63  ;;  %v1028_v7 = vmul.f32 %v2008_v1, %v2008_v1  ;;  %v564_v8 = vadd.f32 %v1991_v25, %v563_v61  ;;  %v575_v9 = vadd.f32 %v1581_v5, %v1991_v25  ;;  %v1613_v10 = vpop.f32.mrf.mxu1 }
 0x23c   :  { %v2017_v11 = vsel %vm888_vm9, %v844_v60, %v904_v3  ;;  %vm886_vm10 = vcmp.ge.f32.partialorder %v836_v4, 0.0  ;;  %v902_v12 = vmul.f32 0.01, %v836_v4  ;;  %v847_v13 = vadd.f32 %v1613_v10, %v1996_v26  ;;  %v566_v14 = vpop.f32.mrf.mxu0 }
 0x23d   :  { %1046 = vadd.xlane.f32.xlu1 %v1028_v7  ;;  %vm614_vm11 = vcmp.ge.f32.partialorder %v564_v8, 0.0  ;;  %v630_v15 = vmul.f32 0.01, %v564_v8  ;;  %vm617_vm12 = vcmp.ge.f32.partialorder %v575_v9, 0.0  ;;  %v633_v16 = vmul.f32 0.01, %v575_v9  ;;  %v838_v17 = vpop.f32.mrf.mxu1 }
 0x23e   :  { %v2020_v18 = vsel %vm886_vm10, %v836_v4, %v902_v12  ;;  %vm889_vm13 = vcmp.ge.f32.partialorder %v847_v13, 0.0  ;;  %v905_v19 = vmul.f32 0.01, %v847_v13  ;;  %v2022_v20 = vadd.f32 %v914_v50, %v642_v46  ;;  %v1584_v21 = vpop.f32.mrf.mxu0 }
 0x23f   :  { %v2024_v22 = vsel %vm614_vm11, %v564_v8, %v630_v15  ;;  %v649_v23 = vsel %vm617_vm12, %v575_v9, %v633_v16  ;;  %v839_v24 = vadd.f32 %v1996_v26, %v838_v17  ;;  %v2027_v27 = vadd.f32 %v917_v58, %v645_v54  ;;  %v1616_v28 = vpop.f32.mrf.mxu1 }
 0x240   :  { %v921_v29 = vsel %vm889_vm13, %v847_v13, %v905_v19  ;;  %v1026_v30 = vmul.f32 %v2022_v20, %v2022_v20  ;;  %v567_v31 = vadd.f32 %v1991_v25, %v566_v14  ;;  %v588_v32 = vadd.f32 %v1584_v21, %v1991_v25  ;;  %v579_v33 = vpop.f32.mrf.mxu0 }
 0x241   :  { %vm887_vm14 = vcmp.ge.f32.partialorder %v839_v24, 0.0  ;;  %v903_v34 = vmul.f32 0.01, %v839_v24  ;;  %v1029_v35 = vmul.f32 %v2027_v27, %v2027_v27  ;;  %v1385_v36 = vpack.c.bf16 %v2027_v27, %v2008_v1  ;;  %v851_v37 = vpop.f32.mrf.mxu1 }
 0x242   :  { %1042 = vadd.xlane.f32.xlu0 %v1026_v30  ;;  %vm615_vm15 = vcmp.ge.f32.partialorder %v567_v31, 0.0  ;;  %v631_v38 = vmul.f32 0.01, %v567_v31  ;;  %vm620_vm0 = vcmp.ge.f32.partialorder %v588_v32, 0.0  ;;  %v636_v39 = vmul.f32 0.01, %v588_v32  ;;  %v1585_v40 = vpop.f32.mrf.mxu0 }
 0x243   :  { %v2037_v41 = vsel %vm887_vm14, %v839_v24, %v903_v34  ;;  %1048 = vadd.xlane.f32.xlu1 %v1029_v35  ;;  %1464 = vst [vmem:[#allocation15 + $0x8] sm:$0xff] %v1385_v36   ;;  %v860_v42 = vadd.f32 %v1616_v28, %v1996_v26  ;;  %v2040_v43 = vadd.f32 %v915_v2, %v643_v62  ;;  %v1617_v45 = vpop.f32.mrf.mxu1 }
 0x244   :  { %v580_v44 = vadd.f32 %v1991_v25, %v579_v33  ;;  %v2043_v46 = vsel %vm615_vm15, %v567_v31, %v631_v38  ;;  %v2045_v47 = vsel %vm620_vm0, %v588_v32, %v636_v39  ;;  %v852_v48 = vadd.f32 %v1996_v26, %v851_v37  ;;  %v582_v50 = vpop.f32.mrf.mxu0 }
 0x245   :  { %v591_v49 = vadd.f32 %v1585_v40, %v1991_v25  ;;  %vm892_vm1 = vcmp.ge.f32.partialorder %v860_v42, 0.0  ;;  %v908_v51 = vmul.f32 0.01, %v860_v42  ;;  %v1027_v52 = vmul.f32 %v2040_v43, %v2040_v43  ;;  %v854_v54 = vpop.f32.mrf.mxu1 }
 0x246   :  { %v1380_v53 = vpack.c.bf16 %v2040_v43, %v2022_v20  ;;  %vm618_vm2 = vcmp.ge.f32.partialorder %v580_v44, 0.0  ;;  %v634_v55 = vmul.f32 0.01, %v580_v44  ;;  %vm890_vm3 = vcmp.ge.f32.partialorder %v852_v48, 0.0  ;;  %v1588_v57 = vpop.f32.mrf.mxu0 }
 0x247   :  { %v906_v56 = vmul.f32 0.01, %v852_v48  ;;  %v924_v58 = vsel %vm892_vm1, %v860_v42, %v908_v51  ;;  %1044 = vadd.xlane.f32.xlu0 %v1027_v52  ;;  %vm621_vm4 = vcmp.ge.f32.partialorder %v591_v49, 0.0  ;;  %v637_v59 = vmul.f32 0.01, %v591_v49  ;;  %v1620_v61 = vpop.f32.mrf.mxu1 }
 0x248   :  { %1381 = vst [vmem:[#allocation15] sm:$0xff] %v1380_v53   ;;  %v863_v60 = vadd.f32 %v1617_v45, %v1996_v26  ;;  %v2054_v62 = vsel %vm618_vm2, %v580_v44, %v634_v55  ;;  %v2060_v0 = vadd.f32 %v2017_v11, %v2011_v6  ;;  %v855_v2 = vadd.f32 %v1996_v26, %v854_v54  ;;  %v595_v3 = vpop.f32.mrf.mxu0 }
 0x249   :  { %v2056_v63 = vsel %vm890_vm3, %v852_v48, %v906_v56  ;;  %v653_v4 = vsel %vm621_vm4, %v591_v49, %v637_v59  ;;  %v2063_v7 = vadd.f32 %v921_v29, %v649_v23  ;;  %v867_v8 = vpop.f32.mrf.mxu1  ;;  %v583_v12 = vadd.f32 %v1991_v25, %v582_v50 }
 0x24a   :  { %vm893_vm5 = vcmp.ge.f32.partialorder %v863_v60, 0.0  ;;  %v909_v5 = vmul.f32 0.01, %v863_v60  ;;  %v1032_v9 = vmul.f32 %v2060_v0, %v2060_v0  ;;  %vm891_vm6 = vcmp.ge.f32.partialorder %v855_v2, 0.0  ;;  %v1589_v15 = vpop.f32.mrf.mxu0 }
 0x24b   :  { %v907_v10 = vmul.f32 0.01, %v855_v2  ;;  %v1033_v6 = vmul.f32 %v2063_v7, %v2063_v7  ;;  %v1395_v11 = vpack.c.bf16 %v2063_v7, %v2060_v0  ;;  %v604_v14 = vadd.f32 %v1588_v57, %v1991_v25  ;;  %v1621_v28 = vpop.f32.mrf.mxu1 }
 0x24c   :  { %v925_v13 = vsel %vm893_vm5, %v863_v60, %v909_v5  ;;  %1054 = vadd.xlane.f32.xlu0 %v1032_v9  ;;  %vm619_vm7 = vcmp.ge.f32.partialorder %v583_v12, 0.0  ;;  %v635_v17 = vmul.f32 0.01, %v583_v12  ;;  %v876_v19 = vadd.f32 %v1620_v61, %v1996_v26  ;;  %v598_v35 = vpop.f32.mrf.mxu0 }
 0x24d   :  { %v923_v16 = vsel %vm891_vm6, %v855_v2, %v907_v10  ;;  %1056 = vadd.xlane.f32.xlu1 %v1033_v6  ;;  %1466 = vst [vmem:[#allocation15 + $0x18] sm:$0xff] %v1395_v11   ;;  %vm624_vm8 = vcmp.ge.f32.partialorder %v604_v14, 0.0  ;;  %v640_v21 = vmul.f32 0.01, %v604_v14  ;;  %v2076_v23 = vadd.f32 %v2020_v18, %v2024_v22  ;;  %v870_v42 = vpop.f32.mrf.mxu1 }
 0x24e   :  { %v596_v24 = vadd.f32 %v1991_v25, %v595_v3  ;;  %v651_v29 = vsel %vm619_vm7, %v583_v12, %v635_v17  ;;  %vm896_vm9 = vcmp.ge.f32.partialorder %v876_v19, 0.0  ;;  %v912_v30 = vmul.f32 0.01, %v876_v19 }
 0x24f   :  { %v868_v31 = vadd.f32 %v1996_v26, %v867_v8  ;;  %v656_v32 = vsel %vm624_vm8, %v604_v14, %v640_v21  ;;  %v1030_v33 = vmul.f32 %v2076_v23, %v2076_v23  ;;  %v2084_v18 = vadd.f32 %v2037_v41, %v2043_v46 }
 0x250   :  { %vm622_vm10 = vcmp.ge.f32.partialorder %v596_v24, 0.0  ;;  %v638_v34 = vmul.f32 0.01, %v596_v24  ;;  %v928_v36 = vsel %vm896_vm9, %v876_v19, %v912_v30  ;;  %v607_v38 = vadd.f32 %v1589_v15, %v1991_v25 }
 0x251   :  { %vm894_vm11 = vcmp.ge.f32.partialorder %v868_v31, 0.0  ;;  %v910_v37 = vmul.f32 0.01, %v868_v31  ;;  %1050 = vadd.xlane.f32.xlu0 %v1030_v33  ;;  %v879_v39 = vadd.f32 %v1621_v28, %v1996_v26  ;;  %v2089_v40 = vadd.f32 %v924_v58, %v2045_v47 }
 0x252   :  { %v654_v22 = vsel %vm622_vm10, %v596_v24, %v638_v34  ;;  %v1031_v45 = vmul.f32 %v2084_v18, %v2084_v18  ;;  %v1390_v48 = vpack.c.bf16 %v2084_v18, %v2076_v23  ;;  %v599_v41 = vadd.f32 %v1991_v25, %v598_v35 }
 0x253   :  { %v926_v44 = vsel %vm894_vm11, %v868_v31, %v910_v37  ;;  %vm625_vm12 = vcmp.ge.f32.partialorder %v607_v38, 0.0  ;;  %v641_v46 = vmul.f32 0.01, %v607_v38  ;;  %vm897_vm13 = vcmp.ge.f32.partialorder %v879_v39, 0.0 }
 0x254   :  { %v913_v49 = vmul.f32 0.01, %v879_v39  ;;  %1052 = vadd.xlane.f32.xlu1 %v1031_v45  ;;  %1465 = vst [vmem:[#allocation15 + $0x10] sm:$0xff] %v1390_v48   ;;  %v1036_v47 = vmul.f32 %v2089_v40, %v2089_v40  ;;  %vm623_vm14 = vcmp.ge.f32.partialorder %v599_v41, 0.0  ;;  %v639_v50 = vmul.f32 0.01, %v599_v41 }
 0x255   :  { %v871_v51 = vadd.f32 %v1996_v26, %v870_v42  ;;  %v657_v52 = vsel %vm625_vm12, %v607_v38, %v641_v46  ;;  %v2099_v54 = vadd.f32 %v925_v13, %v653_v4  ;;  %v2103_v25 = vadd.f32 %v2056_v63, %v2054_v62 }
 0x256   :  { %v929_v53 = vsel %vm897_vm13, %v879_v39, %v913_v49  ;;  %1062 = vadd.xlane.f32.xlu0 %v1036_v47  ;;  %v655_v55 = vsel %vm623_vm14, %v599_v41, %v639_v50  ;;  %v2105_v57 = vadd.f32 %v923_v16, %v651_v29  ;;  %v2111_v59 = vadd.f32 %v926_v44, %v654_v22 }
 0x257   :  { %vm895_vm15 = vcmp.ge.f32.partialorder %v871_v51, 0.0  ;;  %v911_v56 = vmul.f32 0.01, %v871_v51  ;;  %v1405_v58 = vpack.c.bf16 %v2099_v54, %v2089_v40  ;;  %v1037_v26 = vmul.f32 %v2099_v54, %v2099_v54 }
 0x258   :  { %v1034_v61 = vmul.f32 %v2103_v25, %v2103_v25  ;;  %v1400_v62 = vpack.c.bf16 %v2105_v57, %v2103_v25  ;;  %v2119_v2 = vadd.f32 %v928_v36, %v656_v32  ;;  %v2121_v3 = vadd.f32 %v929_v53, %v657_v52 }
 0x259   :  { %v927_v60 = vsel %vm895_vm15, %v871_v51, %v911_v56  ;;  %1468 = vst [vmem:[#allocation15 + $0x28] sm:$0xff] %v1405_v58   ;;  %1064 = vadd.xlane.f32.xlu1 %v1037_v26  ;;  %v1038_v4 = vmul.f32 %v2111_v59, %v2111_v59  ;;  %v1035_v5 = vmul.f32 %v2105_v57, %v2105_v57 }
 0x25a   :  { %v2117_v63 = vadd.f32 %v927_v60, %v655_v55  ;;  %1058 = vadd.xlane.f32.xlu0 %v1034_v61  ;;  %1467 = vst [vmem:[#allocation15 + $0x20] sm:$0xff] %v1400_v62   ;;  %v1415_v9 = vpack.c.bf16 %v2121_v3, %v2119_v2  ;;  %v1040_v12 = vmul.f32 %v2119_v2, %v2119_v2 }
 0x25b   :  { %v1041_v13 = vmul.f32 %v2121_v3, %v2121_v3 }
 0x25c   :  { %v1410_v8 = vpack.c.bf16 %v2117_v63, %v2111_v59  ;;  %v1039_v10 = vmul.f32 %v2117_v63, %v2117_v63  ;;  %1470 = vst [vmem:[#allocation15 + $0x38] sm:$0xff] %v1415_v9  }
 0x25d   :  { %1060 = vadd.xlane.f32.xlu1 %v1035_v5 }
 0x25e   :  { %1469 = vst [vmem:[#allocation15 + $0x30] sm:$0xff] %v1410_v8   ;;  %1066 = vadd.xlane.f32.xlu0 %v1038_v4 }
 0x261   :  { %1068 = vadd.xlane.f32.xlu1 %v1039_v10 }
 0x262   :  { %1070 = vadd.xlane.f32.xlu0 %v1040_v12 }
 0x265   :  { %1072 = vadd.xlane.f32.xlu1 %v1041_v13 }
 0x266   :  { %1827 = shalt.err (!%p1824_p12)
}
 0x267   :  { %1213 = dma.vmem_to_hbm [thread:$0]  %s1208_s8, 1024, %s2174_s9, [#allocation8], %s1867_s28, %s1867_s28, %s1868_s29  }
 0x268   :  { %s1875_s9 = smov [#allocation16]  }
 0x269   :  { %s1219_s22 = sshll.u32 %s1875_s9, 4  ;;  %s1220_s22 = int_to_ptr.vmem [resolvable:$true] %s1219_s22 }
 0x26a   :  { %s1836_s23 = scalar_lea.vmem %s1220_s22, 1024  ;;  %p1841_p0 = scmp.lt.s32.totalorder %s1220_s22, %s1220_s22 }
 0x26b   :  { %p1837_p13 = scmp.ne.s32.totalorder %s1220_s22, %s1836_s23  ;;  %p1842_p2 = scmp.lt.s32.totalorder %s1836_s23, %s1836_s23 }
 0x26d   :  { %p1843_p1 = por %p1842_p2, %p1841_p0 }
 0x26f   :  { %p1844_p3 = pnand %p1843_p1, %p1837_p13 }
 0x2c6   :  { %v1047_v6 = vpop.xlane.xlu1 %1046 }
 0x2c7   :  { %v1076_v11 = vmax.f32 %v1047_v6, 1e-24 }
 0x2c9   :  { %1680 = vrsqrt.f32 %v1076_v11 }
 0x2cb   :  { %v1043_v14 = vpop.xlane.xlu0 %1042 }
 0x2cc   :  { %v1049_v15 = vpop.xlane.xlu1 %1048  ;;  %v1074_v16 = vmax.f32 %v1043_v14, 1e-24 }
 0x2cd   :  { %v1077_v17 = vmax.f32 %v1049_v15, 1e-24 }
 0x2cf   :  { %1682 = vrsqrt.f32 %v1077_v17 }
 0x2d0   :  { %v1045_v19 = vpop.xlane.xlu0 %1044  ;;  %1684 = vrsqrt.f32 %v1074_v16 }
 0x2d1   :  { %v1075_v21 = vmax.f32 %v1045_v19, 1e-24 }
 0x2d3   :  { %1686 = vrsqrt.f32 %v1075_v21 }
 0x2d5   :  { %v1055_v24 = vpop.xlane.xlu0 %1054 }
 0x2d6   :  { %v1080_v28 = vmax.f32 %v1055_v24, 1e-24  ;;  %v1057_v29 = vpop.xlane.xlu1 %1056  ;;  %v1681_v31 = vpop.eup %1680 }
 0x2d7   :  { %v1081_v30 = vmax.f32 %v1057_v29, 1e-24  ;;  %v1108_v35 = vmul.f32 %v1681_v31, %v2008_v1 }
 0x2d8   :  { %1688 = vrsqrt.f32 %v1080_v28 }
 0x2d9   :  { %1690 = vrsqrt.f32 %v1081_v30 }
 0x2da   :  { %v1051_v32 = vpop.xlane.xlu0 %1050 }
 0x2db   :  { %v1078_v33 = vmax.f32 %v1051_v32, 1e-24 }
 0x2dc   :  { %v1683_v34 = vpop.eup %1682 }
 0x2dd   :  { %v1109_v36 = vmul.f32 %v1683_v34, %v2027_v27  ;;  %v1053_v37 = vpop.xlane.xlu1 %1052  ;;  %v1685_v22 = vpop.eup %1684  ;;  %1692 = vrsqrt.f32 %v1078_v33 }
 0x2de   :  { %v1079_v38 = vmax.f32 %v1053_v37, 1e-24  ;;  %v1106_v48 = vmul.f32 %v1685_v22, %v2022_v20 }
 0x2df   :  { %v1425_v39 = vpack.c.bf16 %v1109_v36, %v1108_v35  ;;  %v1063_v42 = vpop.xlane.xlu0 %1062 }
 0x2e0   :  { %v1687_v44 = vpop.eup %1686  ;;  %1694 = vrsqrt.f32 %v1079_v38  ;;  %v1084_v45 = vmax.f32 %v1063_v42, 1e-24 }
 0x2e1   :  { %1471 = vst [vmem:[#allocation16 + $0x8] sm:$0xff] %v1425_v39   ;;  %v1107_v41 = vmul.f32 %v1687_v44, %v2040_v43 }
 0x2e2   :  { %v1065_v46 = vpop.xlane.xlu1 %1064  ;;  %1696 = vrsqrt.f32 %v1084_v45 }
 0x2e3   :  { %v1420_v49 = vpack.c.bf16 %v1107_v41, %v1106_v48  ;;  %v1085_v1 = vmax.f32 %v1065_v46, 1e-24  ;;  %v1059_v47 = vpop.xlane.xlu0 %1058 }
 0x2e4   :  { %v1082_v27 = vmax.f32 %v1059_v47, 1e-24 }
 0x2e5   :  { %v1689_v50 = vpop.eup %1688  ;;  %1421 = vst [vmem:[#allocation16] sm:$0xff] %v1420_v49   ;;  %1698 = vrsqrt.f32 %v1085_v1 }
 0x2e6   :  { %v1691_v51 = vpop.eup %1690  ;;  %v1061_v52 = vpop.xlane.xlu1 %1060  ;;  %v1112_v53 = vmul.f32 %v1689_v50, %v2060_v0  ;;  %1700 = vrsqrt.f32 %v1082_v27 }
 0x2e7   :  { %v1113_v55 = vmul.f32 %v1691_v51, %v2063_v7  ;;  %v1083_v20 = vmax.f32 %v1061_v52, 1e-24  ;;  %v1067_v56 = vpop.xlane.xlu0 %1066 }
 0x2e8   :  { %v1086_v58 = vmax.f32 %v1067_v56, 1e-24 }
 0x2e9   :  { %v1435_v43 = vpack.c.bf16 %v1113_v55, %v1112_v53  ;;  %1702 = vrsqrt.f32 %v1083_v20 }
 0x2ea   :  { %v1069_v26 = vpop.xlane.xlu1 %1068  ;;  %v1693_v60 = vpop.eup %1692  ;;  %1704 = vrsqrt.f32 %v1086_v58 }
 0x2eb   :  { %1473 = vst [vmem:[#allocation16 + $0x18] sm:$0xff] %v1435_v43   ;;  %v1087_v61 = vmax.f32 %v1069_v26, 1e-24  ;;  %v1071_v62 = vpop.xlane.xlu0 %1070  ;;  %v1110_v8 = vmul.f32 %v1693_v60, %v2076_v23 }
 0x2ec   :  { %v1088_v4 = vmax.f32 %v1071_v62, 1e-24 }
 0x2ed   :  { %v1695_v5 = vpop.eup %1694  ;;  %1706 = vrsqrt.f32 %v1087_v61 }
 0x2ee   :  { %v1111_v0 = vmul.f32 %v1695_v5, %v2084_v18  ;;  %v1073_v7 = vpop.xlane.xlu1 %1072  ;;  %1708 = vrsqrt.f32 %v1088_v4 }
 0x2ef   :  { %v1089_v9 = vmax.f32 %v1073_v7, 1e-24  ;;  %v1697_v10 = vpop.eup %1696 }
 0x2f0   :  { %v1430_v12 = vpack.c.bf16 %v1111_v0, %v1110_v8  ;;  %v1116_v6 = vmul.f32 %v1697_v10, %v2089_v40 }
 0x2f1   :  { %1710 = vrsqrt.f32 %v1089_v9 }
 0x2f2   :  { %v1699_v13 = vpop.eup %1698  ;;  %1472 = vst [vmem:[#allocation16 + $0x10] sm:$0xff] %v1430_v12  }
 0x2f3   :  { %v1117_v11 = vmul.f32 %v1699_v13, %v2099_v54  ;;  %v1701_v14 = vpop.eup %1700 }
 0x2f4   :  { %v1114_v23 = vmul.f32 %v1701_v14, %v2103_v25 }
 0x2f5   :  { %v1445_v15 = vpack.c.bf16 %v1117_v11, %v1116_v6 }
 0x2f6   :  { %v1703_v16 = vpop.eup %1702 }
 0x2f7   :  { %1475 = vst [vmem:[#allocation16 + $0x28] sm:$0xff] %v1445_v15   ;;  %v1115_v18 = vmul.f32 %v1703_v16, %v2105_v57  ;;  %v1705_v17 = vpop.eup %1704 }
 0x2f8   :  { %v1118_v24 = vmul.f32 %v1705_v17, %v2111_v59 }
 0x2f9   :  { %v1440_v19 = vpack.c.bf16 %v1115_v18, %v1114_v23 }
 0x2fa   :  { %v1707_v21 = vpop.eup %1706 }
 0x2fb   :  { %1474 = vst [vmem:[#allocation16 + $0x20] sm:$0xff] %v1440_v19   ;;  %v1119_v28 = vmul.f32 %v1707_v21, %v2117_v63  ;;  %v1709_v29 = vpop.eup %1708 }
 0x2fc   :  { %v1120_v54 = vmul.f32 %v1709_v29, %v2119_v2 }
 0x2fd   :  { %v1450_v40 = vpack.c.bf16 %v1119_v28, %v1118_v24 }
 0x2fe   :  { %v1711_v30 = vpop.eup %1710 }
 0x2ff   :  { %1476 = vst [vmem:[#allocation16 + $0x30] sm:$0xff] %v1450_v40   ;;  %v1121_v25 = vmul.f32 %v1711_v30, %v2121_v3 }
 0x301   :  { %v1455_v31 = vpack.c.bf16 %v1121_v25, %v1120_v54 }
 0x303   :  { %1477 = vst [vmem:[#allocation16 + $0x38] sm:$0xff] %v1455_v31  }
 0x304   :  { %1847 = shalt.err (!%p1844_p3)
}
 0x305   :  { %1225 = dma.vmem_to_hbm [thread:$0]  %s1220_s22, 1024, %s2175_s10, [#allocation17], %s1867_s28, %s1867_s28, %s1868_s29  }
 0x306   :  { %1862 = dma.done.wait [#allocation8], 1024  }
 0x307   :  { %1863 = vsyncadd [#allocation8], 4294966272 }
 0x308   :  { %1864 = dma.done.wait [#allocation17], 1024  }
 0x309   :  { %1865 = vsyncadd [#allocation17], 4294966272 }
 0x30a   :  { %1232 = vsyncpa [#allocation7], 1 }
 0x30b   :  { %1233 = vsyncpa [#allocation10], 1 }
 0x30c   :  { %1234 = vsyncpa [#allocation13], 1 }
 0x30d   :  { %1235 = vsyncpa [#allocation8], 1 }
 0x30e   :  { %1236 = vsyncpa [#allocation17], 1 }

</bundles_post_ra>
